<compile_context>
chip_gen: v5e
topology: v5e:2x2
jax: 0.10.0
libtpu: 0.0.40
codegen_flags: <defaults>
</compile_context>

<pallas_src>
import functools

import jax
import jax.numpy as jnp
from jax.experimental import pallas as pl
from jax.experimental.pallas import tpu as pltpu

_VMEM = pltpu.MemorySpace.VMEM
_NEG = -1.0e4        # logit padding value -> zero focal / dice contribution
_EPS = 1.0e-7


def _round_up(x, m):
    return ((x + m - 1) // m) * m


# ----------------------------- in-kernel focal element math -----------------------------

def _focal_terms(x, t, alpha, gamma):
    """Sigmoid focal loss per element + sigmoid(x); one exp shared, approx reciprocal on EUP."""
    e = jnp.exp(-jnp.abs(x))
    inv1pe = pl.reciprocal(1.0 + e, approx=True)
    prob = jnp.where(x >= 0.0, 1.0, e) * inv1pe                    # == sigmoid(x)
    ce = jnp.maximum(x, 0.0) - x * t + jnp.log1p(e)                # stable BCE-with-logits
    p_t = prob * t + (1.0 - prob) * (1.0 - t)
    q = 1.0 - p_t
    if gamma == 2.0:
        mod = q * q
    else:
        mod = jnp.power(jnp.maximum(q, 1e-30), gamma)
    loss = ce * mod
    if alpha >= 0:
        loss = (alpha * t + (1.0 - alpha) * (1.0 - t)) * loss
    return loss, prob


# ----------------------------- Pallas kernels ------------------------------

def _focal_rowsum_kernel(x_ref, t_ref, w_ref, o_ref, *, alpha, gamma):
    # weighted sigmoid focal loss; per-lane partial sums (reduced over sublanes), lanes summed in JAX
    x = x_ref[...].astype(jnp.float32)
    t = t_ref[...].astype(jnp.float32)
    w = w_ref[...].astype(jnp.float32)
    loss, _ = _focal_terms(x, t, alpha, gamma)
    o_ref[...] = jnp.sum(loss * w, axis=0, keepdims=True)          # (1, 128)


def _mask_focal_dice_kernel(bim_ref, x_ref, t_ref, colw_ref, o_ref, *, alpha, gamma, cell_coef):
    # fused mask focal + dice over one row block; per-element weights derived in-kernel.
    del bim_ref
    x = x_ref[...].astype(jnp.float32)                              # [TR, HWp]
    t = t_ref[...].astype(jnp.float32)
    colw = colw_ref[0:1, :].astype(jnp.float32)                     # [1, HWp] per-image column factor
    loss, prob = _focal_terms(x, t, alpha, gamma)
    w = jnp.where(t > 0.5, cell_coef, 1.0) * colw
    focal_rows = jnp.sum(loss * w, axis=1, keepdims=True)           # [TR, 1]
    num = 2.0 * jnp.sum(prob * t, axis=1, keepdims=True)
    den = jnp.sum(prob, axis=1, keepdims=True) + jnp.sum(t, axis=1, keepdims=True)
    dice_rows = 1.0 - (num + 1.0) / (den + 1.0)                     # [TR, 1]
    lane = jax.lax.broadcasted_iota(jnp.int32, o_ref.shape, 1)
    o_ref[...] = jnp.where(lane == 0, focal_rows, 0.0) + jnp.where(lane == 1, dice_rows, 0.0)


def _box_pair_kernel(sb_ref, tb_ref, l1w_ref, keep_ref, gw_ref, o_ref, *, eps):
    # matched-pair boxes: weighted L1 + elementwise GIoU (mother/daughter blend), lane-dense [8, Np]
    sb = sb_ref[...].astype(jnp.float32)
    tb = tb_ref[...].astype(jnp.float32)
    l1 = jnp.sum(jnp.abs(sb - tb) * l1w_ref[...].astype(jnp.float32))

    def _giou(s, t):
        sx1 = s[0:1] - 0.5 * s[2:3]; sy1 = s[1:2] - 0.5 * s[3:4]
        sx2 = s[0:1] + 0.5 * s[2:3]; sy2 = s[1:2] + 0.5 * s[3:4]
        tx1 = t[0:1] - 0.5 * t[2:3]; ty1 = t[1:2] - 0.5 * t[3:4]
        tx2 = t[0:1] + 0.5 * t[2:3]; ty2 = t[1:2] + 0.5 * t[3:4]
        area_s = (sx2 - sx1) * (sy2 - sy1)
        area_t = (tx2 - tx1) * (ty2 - ty1)
        iw = jnp.maximum(jnp.minimum(sx2, tx2) - jnp.maximum(sx1, tx1), 0.0)
        ih = jnp.maximum(jnp.minimum(sy2, ty2) - jnp.maximum(sy1, ty1), 0.0)
        inter = iw * ih
        union = area_s + area_t - inter
        iou = inter / (union + eps)
        cw = jnp.maximum(jnp.maximum(sx2, tx2) - jnp.minimum(sx1, tx1), 0.0)
        ch = jnp.maximum(jnp.maximum(sy2, ty2) - jnp.minimum(sy1, ty1), 0.0)
        areac = cw * ch
        return iou - (areac - union) / (areac + eps)

    g_mother = _giou(sb[0:4], tb[0:4])
    g_daughter = _giou(sb[4:8], tb[4:8])
    keep = keep_ref[...].astype(jnp.float32)
    g = jnp.where(keep > 0.5, 0.5 * (g_mother + g_daughter), g_mother)
    gl = jnp.sum((1.0 - g) * gw_ref[...].astype(jnp.float32))
    sub = jax.lax.broadcasted_iota(jnp.int32, o_ref.shape, 0)
    o_ref[...] = jnp.where(sub == 0, l1, gl)


# ----------------------------- kernel wrappers ------------------------------

def focal_weighted_sum(logits, targets, weights, alpha, gamma):
    """Sum of weighted sigmoid focal loss over all elements (flattened lane-dense to (rows,128))."""
    n = logits.size
    rows = max(8, _round_up(-(-n // 128), 8))
    total = rows * 128

    def pad(v, fill):
        return jnp.pad(v.reshape(-1), (0, total - n), constant_values=fill).reshape(rows, 128)

    out = pl.pallas_call(
        functools.partial(_focal_rowsum_kernel, alpha=float(alpha), gamma=float(gamma)),
        out_shape=jax.ShapeDtypeStruct((1, 128), jnp.float32),
        in_specs=[pl.BlockSpec(memory_space=_VMEM)] * 3,
        out_specs=pl.BlockSpec(memory_space=_VMEM),
    )(pad(logits, _NEG), pad(targets, 0.0), pad(weights, 0.0))
    return jnp.sum(out)


def fused_mask_focal_dice(x_rows, t_rows, colw_rows, block_img, blk_rows, alpha, gamma, cell_coef):
    """Row-tiled fused focal+dice over mask rows; returns per-row (focal_sum, dice) partials."""
    r_pad, hw_pad = x_rows.shape
    num_blocks = r_pad // blk_rows
    grid_spec = pltpu.PrefetchScalarGridSpec(
        num_scalar_prefetch=1,
        grid=(num_blocks,),
        in_specs=[pl.BlockSpec((blk_rows, hw_pad), lambda i, bim: (i, 0)),
                  pl.BlockSpec((blk_rows, hw_pad), lambda i, bim: (i, 0)),
                  pl.BlockSpec((8, hw_pad), lambda i, bim: (bim[i], 0))],
        out_specs=pl.BlockSpec((blk_rows, 128), lambda i, bim: (i, 0)),
    )
    out = pl.pallas_call(
        functools.partial(_mask_focal_dice_kernel, alpha=float(alpha), gamma=float(gamma),
                          cell_coef=float(cell_coef)),
        out_shape=jax.ShapeDtypeStruct((r_pad, 128), jnp.float32),
        grid_spec=grid_spec,
        compiler_params=pltpu.CompilerParams(
            dimension_semantics=("parallel",),
            vmem_limit_bytes=32 * 1024 * 1024),
    )(block_img, x_rows, t_rows, colw_rows)
    return out[:, 0], out[:, 1]


def box_pair_losses(src_boxes, target_boxes, l1w, keep, gw, eps=_EPS):
    """Weighted L1 sum + matched-pair GIoU loss sum for [N, 8] boxes (lane-dense [8, Np] layout)."""
    n = src_boxes.shape[0]
    npad = max(128, _round_up(n, 128))

    def pad_t(x):
        return jnp.pad(x.T.astype(jnp.float32), ((0, 0), (0, npad - n)), constant_values=0.0)

    keep2 = jnp.pad(keep.astype(jnp.float32)[None, :], ((0, 0), (0, npad - n)))
    gw2 = jnp.pad(gw.astype(jnp.float32)[None, :], ((0, 0), (0, npad - n)))
    out = pl.pallas_call(
        functools.partial(_box_pair_kernel, eps=float(eps)),
        out_shape=jax.ShapeDtypeStruct((2, 128), jnp.float32),
        in_specs=[pl.BlockSpec(memory_space=_VMEM)] * 5,
        out_specs=pl.BlockSpec(memory_space=_VMEM),
    )(pad_t(src_boxes), pad_t(target_boxes), pad_t(l1w), keep2, gw2)
    return out[0, 0], out[1, 0]


# ----------------------------- SetCriterion (JAX glue + Pallas hot paths) ------------------------------

class SetCriterionPallas:
    def __init__(self, num_classes, args, focal_alpha=0.25, focal_gamma=2.0):
        self.num_classes = num_classes
        self.args = args
        self.focal_alpha = focal_alpha
        self.focal_gamma = focal_gamma
        self.losses = ['labels', 'boxes', 'masks']
        self.eval_only = False
        # registered buffer (used only by the non-focal CE path; kept for parity)
        self.empty_weight = jnp.ones((num_classes + 1,), jnp.float32).at[-1].set(args['eos_coef'])

    # --- helpers -------------------------------------------------------------
    def _get_src_permutation_idx(self, indices):
        batch_idx = jnp.concatenate([jnp.full_like(src, i) for i, (src, _) in enumerate(indices)])
        src_idx = jnp.concatenate([src for src, _ in indices])
        return batch_idx, src_idx

    # --- losses --------------------------------------------------------------
    def loss_labels_focal(self, outputs, targets, training_method, target_name, indices, num_boxes):
        src_logits = outputs['pred_logits']
        B, Q, L = src_logits.shape
        batch_idx, src_idx = self._get_src_permutation_idx(indices)
        target_classes_o = jnp.concatenate(
            [t[training_method][target_name]['labels'][J] for t, (_, J) in zip(targets, indices)], axis=0)
        target_classes = jnp.full((B, Q, L), self.num_classes, dtype=jnp.int32)
        target_classes = target_classes.at[batch_idx, src_idx].set(target_classes_o)
        onehot = (target_classes == 0).astype(jnp.float32)

        weights = jnp.ones((B, Q, L), jnp.float32)
        num_preds = Q   # 'CoMOT' branch not present in outputs
        weights = weights * jnp.where((onehot[:, :, 1] == 1.0)[:, :, None],
                                      self.args['div_loss_coef'], 1.0)
        weights = weights * jnp.where(onehot == 1.0, self.args['pos_wei_loss_coef'], 1.0)
        # NOTE: reference `weights[t][indices[t][0]][mask] *= coef` chains advanced indexing in
        # PyTorch, writing to a temporary copy — a no-op on `weights`; reproduced as a no-op.
        # TODO(synk): 'track_queries_mask' / FN_det_query_loss_coef branch needs track-query metadata.
        if training_method == 'two_stage':
            weights = weights.at[:, :, 1].set(0.0)

        total = focal_weighted_sum(src_logits, onehot, weights, self.focal_alpha, self.focal_gamma)
        loss_ce = total / Q / num_boxes
        loss_ce = loss_ce * num_preds
        return {training_method + '_loss_ce': loss_ce}

    def loss_boxes(self, outputs, targets, training_method, target_name, indices, num_boxes):
        a = self.args
        batch_idx, src_idx = self._get_src_permutation_idx(indices)
        src_boxes = outputs['pred_boxes'][batch_idx, src_idx]                       # [N, 8]
        target_boxes = jnp.concatenate(
            [t[training_method][target_name]['boxes'][i] for t, (_, i) in zip(targets, indices)
             if not t[training_method][target_name]['empty']], axis=0)
        is_touching_edge = jnp.concatenate(
            [t[training_method][target_name]['is_touching_edge'][i] for t, (_, i) in zip(targets, indices)
             if not t[training_method][target_name]['empty']])
        flexible_divisions = jnp.concatenate(
            [t[training_method][target_name]['flexible_divisions'][i] for t, (_, i) in zip(targets, indices)
             if not t[training_method][target_name]['empty']])

        valid = (target_boxes.sum(-1) > 0).astype(jnp.float32)     # replaces dynamic row filtering
        keep = target_boxes[:, -1] > 0                             # dividing pairs

        # fold the reference's in-place reweighting of loss_bbox into a weight tensor
        w = jnp.ones_like(src_boxes, dtype=jnp.float32)
        w = w.at[:, 4:].set(jnp.where(keep[:, None], a['div_loss_coef'], 0.0))
        w = w * jnp.where(is_touching_edge[:, None], a['touching_edge_loss_coef'], 1.0)
        w = w * jnp.where(flexible_divisions[:, None], a['flex_div_loss_coef'], 1.0)
        w = w * valid[:, None]

        gw = (jnp.where(keep, a['div_loss_coef'], 1.0)
              * jnp.where(is_touching_edge, a['touching_edge_loss_coef'], 1.0)
              * jnp.where(flexible_divisions, a['flex_div_loss_coef'], 1.0)
              * valid)

        l1_sum, giou_sum = box_pair_losses(src_boxes, target_boxes, w, keep, gw)
        return {training_method + '_loss_bbox': l1_sum / num_boxes,
                training_method + '_loss_giou': giou_sum / num_boxes}

    def loss_masks(self, outputs, targets, training_method, target_name, indices, num_boxes):
        a = self.args
        pred_masks = outputs['pred_masks']
        H, W = pred_masks.shape[-2], pred_masks.shape[-1]
        HW = H * W
        hw_pad = _round_up(HW, 128)

        # block-row size: biggest per-image row block keeping 2 streamed inputs x 2 buffers under a
        # ~16 MiB budget (well inside the 32 MiB scoped-VMEM limit set below; portable to v7x).
        nonempty_rows = [2 * int(t[training_method][target_name]['labels'].shape[0])
                         for t in targets if not t[training_method][target_name]['empty']]
        blk_budget = max(8, ((16 * 1024 * 1024) // (16 * hw_pad)) // 8 * 8)
        blk_rows = min(_round_up(max(nonempty_rows), 8), blk_budget)

        x_rows, t_rows, roww, dicem, colw_list, block_img = [], [], [], [], [], []
        img_slot = 0
        for t_i, (target, (src_i, tgt_i)) in enumerate(zip(targets, indices)):
            td = target[training_method][target_name]
            if td['empty']:
                continue
            sm = pred_masks[t_i][src_i]                              # [n, 2, H, W] (mask logits)
            tm = td['masks'][tgt_i].astype(jnp.float32)              # [n, 2, H, W]
            # TODO(synk): nested_tensor_from_tensor_list padding + F.interpolate(mode='area') omitted;
            # targets are assumed to already be at the prediction resolution (identity resample).
            n = int(sm.shape[0])
            division = tm[:, 1].sum(axis=(-1, -2)) > 0               # [n]
            nonempty = tm.reshape(n, -1).sum(-1) > 0                 # [n]  (replaces dynamic filtering)
            touch = td['is_touching_edge'][tgt_i]
            flex = td['flexible_divisions'][tgt_i]

            base = (jnp.where(division, a['div_loss_coef'], 1.0)
                    * jnp.where(touch, a['touching_edge_loss_coef'], 1.0)
                    * jnp.where(flex, a['flex_div_loss_coef'], 1.0)
                    * nonempty.astype(jnp.float32))
            row_w = jnp.stack([base, base * division.astype(jnp.float32)], axis=1)       # [n, 2]
            dice_m = jnp.stack([nonempty.astype(jnp.float32),
                                (nonempty & division).astype(jnp.float32)], axis=1)      # [n, 2]
            # TODO(synk): the reference's no-division-anywhere branch (flatten over 2*HW) is not
            # modeled; the (common) post-concat layout semantics are reproduced instead.

            # per-image column factor (mask_weight_all_cells_coef over pixels covered by any matched
            # target); applied per row's own image — fixes the reference's filtered/unfiltered offset
            # mismatch and is identical whenever no mask rows are empty.
            hw_sel = (tm.sum(axis=(0, 1)) > 0).reshape(-1)
            colw = jnp.where(hw_sel, a['mask_weight_all_cells_coef'], 1.0)
            colw_list.append(jnp.pad(colw, (0, hw_pad - HW), constant_values=0.0))

            r = 2 * n
            r_pad = _round_up(r, blk_rows)
            x_rows.append(jnp.pad(sm.reshape(r, HW), ((0, r_pad - r), (0, hw_pad - HW)),
                                  constant_values=_NEG))
            t_rows.append(jnp.pad(tm.reshape(r, HW), ((0, r_pad - r), (0, hw_pad - HW)),
                                  constant_values=0.0))
            roww.append(jnp.pad(row_w.reshape(r), (0, r_pad - r)))
            dicem.append(jnp.pad(dice_m.reshape(r), (0, r_pad - r)))
            block_img.extend([img_slot] * (r_pad // blk_rows))
            img_slot += 1

        x_all = jnp.concatenate(x_rows, axis=0)
        t_all = jnp.concatenate(t_rows, axis=0)
        roww_all = jnp.concatenate(roww, axis=0)
        dicem_all = jnp.concatenate(dicem, axis=0)
        colw_rows = jnp.broadcast_to(jnp.stack(colw_list)[:, None, :],
                                     (img_slot, 8, hw_pad)).reshape(img_slot * 8, hw_pad)
        block_img = jnp.asarray(block_img, jnp.int32)

        focal_rows, dice_rows = fused_mask_focal_dice(
            x_all, t_all, colw_rows, block_img, blk_rows,
            self.focal_alpha, self.focal_gamma, a['mask_weight_target_cell_coef'])

        loss_mask = jnp.sum(roww_all * focal_rows) / HW / num_boxes
        loss_dice = jnp.sum(dicem_all * dice_rows) / num_boxes
        return {training_method + '_loss_mask': loss_mask,
                training_method + '_loss_dice': loss_dice}

    def get_loss(self, loss, outputs, targets, training_method, target_name, indices, num_boxes):
        loss_map = {'labels': self.loss_labels_focal, 'boxes': self.loss_boxes, 'masks': self.loss_masks}
        assert loss in loss_map
        return loss_map[loss](outputs, targets, training_method, target_name, indices, num_boxes)

    # --- forward --------------------------------------------------------------
    def forward(self, outputs, targets, losses, training_method='main', CoMOT=False):
        # TODO(synk): Hungarian matcher and flex-division target updates are external modules;
        # precomputed matcher `indices` stored on each target are used instead.
        indices = [tuple(t[training_method]['cur_target']['indices']) for t in targets]
        num_boxes = 1  # eval_only=False path of the reference
        sizes = []
        for target in targets:
            td = target[training_method]['cur_target']
            sizes.append(0 if td['empty'] else int(td['labels'].shape[0]))
        for loss in self.losses:
            if sum(sizes) != 0 or (sum(sizes) == 0 and loss == 'labels'):
                losses.update(self.get_loss(loss, outputs, targets, training_method,
                                            'cur_target', indices, num_boxes))
        # TODO(synk): 'aux_outputs' / 'two_stage' / 'OD' / CoMOT branches repeat the same kernels
        # over additional prediction heads with an external matcher; omitted in this synthetic setup.
        return losses


# ----------------------------- synthetic setup & run ------------------------------

def _make_target(n, H, W, dividing, touching, flexible):
    labels = jnp.zeros((n, 2), jnp.int32)
    labels = labels.at[:, 1].set(jnp.asarray([0 if d else 1 for d in dividing], jnp.int32))
    boxes = []
    masks = jnp.zeros((n, 2, H, W), jnp.float32)
    for i in range(n):
        mother = [0.25 + 0.1 * i, 0.45, 0.2, 0.15]
        daughter = [0.25 + 0.1 * i, 0.65, 0.18, 0.12] if dividing[i] else [0.0, 0.0, 0.0, 0.0]
        boxes.append(mother + daughter)
        r0, c0 = 2 + i, 2 + 2 * i
        masks = masks.at[i, 0, r0:r0 + 4, c0:c0 + 4].set(1.0)
        if dividing[i]:
            masks = masks.at[i, 1, r0 + 6:r0 + 9, c0:c0 + 3].set(1.0)
    return {
        'labels': labels,
        'boxes': jnp.asarray(boxes, jnp.float32),
        'masks': masks,
        'is_touching_edge': jnp.asarray(touching, bool),
        'flexible_divisions': jnp.asarray(flexible, bool),
        'empty': False,
    }


if __name__ == "__main__":
    B, Q, L, H, W = 2, 8, 2, 16, 16
    args = dict(
        eos_coef=0.1,
        div_loss_coef=2.0,
        pos_wei_loss_coef=3.0,
        touching_edge_loss_coef=0.5,
        flex_div_loss_coef=1.5,
        mask_weight_target_cell_coef=2.0,
        mask_weight_all_cells_coef=1.25,
        FN_det_query_loss_coef=4.0,
    )

    key = jax.random.PRNGKey(0)
    k1, k2, k3 = jax.random.split(key, 3)
    outputs = {
        'pred_logits': jax.random.normal(k1, (B, Q, L), jnp.float32),
        'pred_boxes': jax.nn.sigmoid(jax.random.normal(k2, (B, Q, 8), jnp.float32)),
        'pred_masks': jax.random.normal(k3, (B, Q, 2, H, W), jnp.float32),
    }

    t0 = _make_target(4, H, W, dividing=[True, False, True, False],
                      touching=[False, True, False, False],
                      flexible=[False, False, False, True])
    t0['indices'] = (jnp.asarray([1, 3, 5, 7], jnp.int32), jnp.asarray([0, 1, 2, 3], jnp.int32))
    t1 = _make_target(4, H, W, dividing=[False, True, False, True],
                      touching=[False, False, True, False],
                      flexible=[True, False, False, False])
    t1['indices'] = (jnp.asarray([0, 2, 4, 6], jnp.int32), jnp.asarray([3, 2, 1, 0], jnp.int32))
    targets = [{'main': {'cur_target': t0}}, {'main': {'cur_target': t1}}]

    criterion = SetCriterionPallas(num_classes=1, args=args, focal_alpha=0.25, focal_gamma=2.0)
    losses = criterion.forward(outputs, targets, losses={}, training_method='main')
    losses = jax.block_until_ready(losses)

    for k in sorted(losses):
        v = float(losses[k])
        assert v == v and abs(v) < 1e9, f"bad value in {k}: {v}"
    print("KERNEL_OK")
</pallas_src>

<mosaic_0001>
module attributes {stable_mosaic.version = 11 : i64} {
  func.func @_focal_rowsum_kernel(%arg0: memref<8x128xf32, #tpu.memory_space<vmem>>, %arg1: memref<8x128xf32, #tpu.memory_space<vmem>>, %arg2: memref<8x128xf32, #tpu.memory_space<vmem>>, %arg3: memref<1x128xf32, #tpu.memory_space<vmem>>) attributes {dimension_semantics = [], scalar_prefetch = 0 : i64, scratch_operands = 0 : i64, tpu.core_type = #tpu.core_type<tc>} {
    %c0 = arith.constant 0 : index
    %c0_0 = arith.constant 0 : index
    %0 = vector.load %arg0[%c0, %c0_0] : memref<8x128xf32, #tpu.memory_space<vmem>>, vector<8x128xf32>
    %c0_1 = arith.constant 0 : index
    %c0_2 = arith.constant 0 : index
    %1 = vector.load %arg1[%c0_1, %c0_2] : memref<8x128xf32, #tpu.memory_space<vmem>>, vector<8x128xf32>
    %c0_3 = arith.constant 0 : index
    %c0_4 = arith.constant 0 : index
    %2 = vector.load %arg2[%c0_3, %c0_4] : memref<8x128xf32, #tpu.memory_space<vmem>>, vector<8x128xf32>
    %3 = math.absf %0 : vector<8x128xf32>
    %cst = arith.constant 0.000000e+00 : f32
    %4 = vector.broadcast %cst : f32 to vector<8x128xf32>
    %5 = arith.subf %4, %3 : vector<8x128xf32>
    %6 = math.exp %5 : vector<8x128xf32>
    %cst_5 = arith.constant 1.000000e+00 : f32
    %7 = vector.broadcast %cst_5 : f32 to vector<8x128xf32>
    %8 = arith.addf %7, %6 : vector<8x128xf32>
    %9 = tpu.reciprocal %8 {approx = true} : vector<8x128xf32> -> vector<8x128xf32>
    %cst_6 = arith.constant 0.000000e+00 : f32
    %10 = vector.broadcast %cst_6 : f32 to vector<8x128xf32>
    %11 = arith.cmpf oge, %0, %10 : vector<8x128xf32>
    %cst_7 = arith.constant 1.000000e+00 : f32
    %12 = vector.broadcast %cst_7 : f32 to vector<8x128xf32>
    %13 = arith.select %11, %12, %6 : vector<8x128xi1>, vector<8x128xf32>
    %14 = arith.mulf %13, %9 : vector<8x128xf32>
    %cst_8 = arith.constant 0.000000e+00 : f32
    %15 = vector.broadcast %cst_8 : f32 to vector<8x128xf32>
    %16 = arith.maximumf %0, %15 : vector<8x128xf32>
    %17 = arith.mulf %0, %1 : vector<8x128xf32>
    %18 = arith.subf %16, %17 : vector<8x128xf32>
    %19 = math.log1p %6 : vector<8x128xf32>
    %20 = arith.addf %18, %19 : vector<8x128xf32>
    %21 = arith.mulf %14, %1 : vector<8x128xf32>
    %cst_9 = arith.constant 1.000000e+00 : f32
    %22 = vector.broadcast %cst_9 : f32 to vector<8x128xf32>
    %23 = arith.subf %22, %14 : vector<8x128xf32>
    %cst_10 = arith.constant 1.000000e+00 : f32
    %24 = vector.broadcast %cst_10 : f32 to vector<8x128xf32>
    %25 = arith.subf %24, %1 : vector<8x128xf32>
    %26 = arith.mulf %23, %25 : vector<8x128xf32>
    %27 = arith.addf %21, %26 : vector<8x128xf32>
    %cst_11 = arith.constant 1.000000e+00 : f32
    %28 = vector.broadcast %cst_11 : f32 to vector<8x128xf32>
    %29 = arith.subf %28, %27 : vector<8x128xf32>
    %30 = arith.mulf %29, %29 : vector<8x128xf32>
    %31 = arith.mulf %20, %30 : vector<8x128xf32>
    %cst_12 = arith.constant 2.500000e-01 : f32
    %32 = vector.broadcast %cst_12 : f32 to vector<8x128xf32>
    %33 = arith.mulf %32, %1 : vector<8x128xf32>
    %cst_13 = arith.constant 1.000000e+00 : f32
    %34 = vector.broadcast %cst_13 : f32 to vector<8x128xf32>
    %35 = arith.subf %34, %1 : vector<8x128xf32>
    %cst_14 = arith.constant 7.500000e-01 : f32
    %36 = vector.broadcast %cst_14 : f32 to vector<8x128xf32>
    %37 = arith.mulf %36, %35 : vector<8x128xf32>
    %38 = arith.addf %33, %37 : vector<8x128xf32>
    %39 = arith.mulf %38, %31 : vector<8x128xf32>
    %40 = arith.mulf %39, %2 : vector<8x128xf32>
    %cst_15 = arith.constant dense<0.000000e+00> : vector<128xf32>
    %41 = vector.multi_reduction <add>, %40, %cst_15 [0] : vector<8x128xf32> to vector<128xf32>
    %42 = vector.shape_cast %41 : vector<128xf32> to vector<1x128xf32>
    %c0_16 = arith.constant 0 : index
    %c0_17 = arith.constant 0 : index
    %43 = vector.load %arg3[%c0_16, %c0_17] : memref<1x128xf32, #tpu.memory_space<vmem>>, vector<1x128xf32>
    tpu.vector_store %arg3[%c0_16, %c0_17], %42 {strides = array<i32>} : memref<1x128xf32, #tpu.memory_space<vmem>>, vector<1x128xf32>,
    return
  }
}

</mosaic_0001>

<bundles_post_ra>
// kernel: tpu_custom_call.1
= control target key start
LH: loop header
LB: loop body
LE: loop exit
PB: predicated region body
PF: predicated region fallthrough
CT: control target
= control target key end

     0   :  { %8 = vsyncpa [#allocation3], 0  ;;  %s267_s0 = inlined_call_operand.hbm [shape: f32[8,128], index: 0, kind: input, shape index: {}]   ;;  %s268_s1 = inlined_call_operand.hbm [shape: f32[8,128], index: 1, kind: input, shape index: {}]   ;;  %s269_s2 = inlined_call_operand.hbm [shape: f32[8,128], index: 2, kind: input, shape index: {}]   ;;  %s270_s3 = inlined_call_operand.hbm [shape: f32[1,128], index: 3, kind: output, shape index: {}]  }
   0x1   :  { %9 = vsyncpa [#allocation6], 0  ;;  %s27_s14 = sshll.u32 %s268_s1, 4  ;;  %s28_s14 = int_to_ptr.hbm [resolvable:$true] %s27_s14 }
   0x2   :  { %10 = vsyncpa [#allocation4], 0  ;;  %s231_s15 = smov [#allocation5]   ;;  %s16_s19 = sshll.u32 %s267_s0, 4  ;;  %s17_s19 = int_to_ptr.hbm [resolvable:$true] %s16_s19 }
   0x3   :  { %s29_s16 = sshll.u32 %s231_s15, 4  ;;  %s232_s20 = smov [#allocation2]   ;;  %s30_s16 = int_to_ptr.vmem [resolvable:$true] %s29_s16 }
   0x4   :  { %32 = dma.hbm_to_vmem [thread:$0]  %s28_s14, 128, %s30_s16, [#allocation6]  }
   0x5   :  { %s18_s21 = sshll.u32 %s232_s20, 4  ;;  %s38_s24 = sshll.u32 %s269_s2, 4  ;;  %s19_s21 = int_to_ptr.vmem [resolvable:$true] %s18_s21  ;;  %s39_s24 = int_to_ptr.hbm [resolvable:$true] %s38_s24 }
   0x6   :  { %21 = dma.hbm_to_vmem [thread:$0]  %s17_s19, 128, %s19_s21, [#allocation3]  }
   0x7   :  { %s233_s1 = smov [#allocation7]  }
   0x8   :  { %s40_s25 = sshll.u32 %s233_s1, 4  ;;  %s41_s25 = int_to_ptr.vmem [resolvable:$true] %s40_s25 }
   0x9   :  { %43 = dma.hbm_to_vmem [thread:$0]  %s39_s24, 128, %s41_s25, [#allocation6]  }
   0xa   :  { %225 = dma.done.wait [#allocation3], 128  }
   0xb   :  { %226 = vsyncadd [#allocation3], 4294967168 }
   0xc   :  { %227 = dma.done.wait [#allocation6], 256  }
   0xd   :  { %228 = vsyncadd [#allocation6], 4294967040  ;;  %v56_v0 = vld [vmem:[#allocation2] sm:$0xff]  ;;  %v57_v7 = vld [vmem:[#allocation5] sm:$0xff]  ;;  %s234_s0 = smov [#allocation8]   ;;  %s108_s28 = sshll.u32 %s270_s3, 4  ;;  %s109_s28 = int_to_ptr.hbm [resolvable:$true] %s108_s28 }
   0xe   :  { %v59_v1 = vand.u32 2147483647, %v56_v0  ;;  %vm65_vm0 = vcmp.ge.f32.partialorder %v56_v0, 0.0  ;;  %v68_v14 = vmax.f32 %v56_v0, 0.0  ;;  %v69_v15 = vmul.f32 %v57_v7, %v56_v0  ;;  %v58_v32 = vld [vmem:[#allocation7] sm:$0xff]  ;;  %s106_s2 = sshll.u32 %s234_s0, 4  ;;  %s107_s2 = int_to_ptr.vmem [resolvable:$true] %s106_s2 }
   0xf   :  { %v83_v16 = vsub.f32 1.0, %v57_v7  ;;  %v89_v25 = vmul.f32 0.25, %v57_v7 }
  0x10   :  { %v60_v2 = vsub.f32 0.0, %v59_v1  ;;  %v70_v21 = vsub.f32 %v68_v14, %v69_v15 }
  0x11   :  { %v90_v26 = vmul.f32 0.75, %v83_v16 }
  0x12   :  { %v61_v3 = vmul.f32 1.442695, %v60_v2 }
  0x13   :  { %v91_v30 = vadd.f32 %v90_v26, %v89_v25 }
  0x14   :  { %123 = vpow2.f32 %v61_v3 }
  0x1a   :  { %v124_v4 = vpop.eup %123 }
  0x1b   :  { %v63_v5 = vadd.f32 1.0, %v124_v4  ;;  %v74_v6 = vmul.f32 -0.5, %v124_v4  ;;  %v66_v8 = vsel %vm65_vm0, 1.0, %v124_v4  ;;  %v77_v10 = vand.u32 2147483647, %v124_v4 }
  0x1d   :  { %125 = vrcp.f32 %v63_v5  ;;  %v75_v9 = vadd.f32 1.0, %v74_v6  ;;  %vm78_vm1 = vcmp.lt.f32.partialorder %v77_v10, 0.0004427343 }
  0x1e   :  { %127 = vlog2.f32 %v63_v5 }
  0x1f   :  { %v76_v18 = vmul.f32 %v124_v4, %v75_v9 }
  0x23   :  { %v126_v11 = vpop.eup %125 }
  0x24   :  { %v128_v12 = vpop.eup %127  ;;  %v67_v13 = vmul.f32 %v126_v11, %v66_v8 }
  0x25   :  { %v73_v17 = vmul.f32 0.6931472, %v128_v12 }
  0x26   :  { %v81_v19 = vmul.f32 %v67_v13, %v57_v7  ;;  %v82_v20 = vsub.f32 1.0, %v67_v13 }
  0x27   :  { %v79_v23 = vsel %vm78_vm1, %v76_v18, %v73_v17 }
  0x28   :  { %v84_v22 = vmul.f32 %v83_v16, %v82_v20  ;;  %v80_v27 = vadd.f32 %v79_v23, %v70_v21 }
  0x2a   :  { %v85_v24 = vadd.f32 %v84_v22, %v81_v19 }
  0x2c   :  { %v86_v28 = vsub.f32 1.0, %v85_v24 }
  0x2e   :  { %v87_v29 = vmul.f32 %v86_v28, %v86_v28 }
  0x30   :  { %v88_v31 = vmul.f32 %v87_v29, %v80_v27 }
  0x32   :  { %v92_v33 = vmul.f32 %v91_v30, %v88_v31 }
  0x34   :  { %v93_v34 = vmul.f32 %v92_v33, %v58_v32 }
  0x36   :  { %v94_v35 = vrot.slane %v93_v34, 4 }
  0x38   :  { %v95_v36 = vadd.f32 %v94_v35, %v93_v34 }
  0x3a   :  { %v96_v37 = vrot.slane %v95_v36, 2 }
  0x3c   :  { %v97_v38 = vadd.f32 %v96_v37, %v95_v36 }
  0x3e   :  { %v98_v39 = vrot.slane %v97_v38, 1 }
  0x40   :  { %v99_v40 = vadd.f32 %v98_v39, %v97_v38 }
  0x42   :  { %100 = vst [vmem:[#allocation8] sm:$0x1] %v99_v40 }
  0x43   :  { %111 = dma.vmem_to_hbm [thread:$0]  %s107_s2, 16, %s109_s28, [#allocation4]  }
  0x44   :  { %229 = dma.done.wait [#allocation4], 16  }
  0x45   :  { %230 = vsyncadd [#allocation4], 4294967280 }
  0x46   :  { %116 = vsyncpa [#allocation3], 1 }
  0x47   :  { %117 = vsyncpa [#allocation6], 1 }
  0x48   :  { %118 = vsyncpa [#allocation4], 1 }

</bundles_post_ra>
